<compile_context>
chip_gen: v5e
topology: v5e:2x2
jax: 0.10.0
libtpu: 0.0.40
codegen_flags: <defaults>
</compile_context>

<pallas_src>
import functools

import numpy as np
import jax
import jax.numpy as jnp
from jax.experimental import pallas as pl
from jax.experimental.pallas import tpu as pltpu


def _round_up(x, m):
    return (x + m - 1) // m * m


def _mix32(x):
    """lowbias32-style integer hash on int32 vectors.

    Logical right shifts are emulated with (arithmetic shift & mask) so the
    whole hash stays in plain signed-int32 ops (portable to Mosaic and to
    interpret mode)."""
    x = x ^ ((x >> 16) & jnp.int32(0xFFFF))
    x = x * jnp.int32(0x7FEB352D)
    x = x ^ ((x >> 15) & jnp.int32(0x1FFFF))
    x = x * jnp.int32(0x735A2D97)
    x = x ^ ((x >> 16) & jnp.int32(0xFFFF))
    return x


def _ffn_kernel(seed_ref, x_ref, w1_ref, b1_ref, w2_ref, b2_ref, o_ref, acc_ref,
                *, dropout_p, training, n_features, block_rows):
    """grid = (row_tiles, hidden_tiles); hidden axis is the reduction axis."""
    # All grid-position reads are hoisted to the top of the body; only their
    # values flow into the pl.when branches (program_id inside a cond branch
    # does not lower in interpret mode).
    i = pl.program_id(0)
    j = pl.program_id(1)
    last_j = pl.num_programs(1) - 1
    row_off = i * jnp.int32(block_rows)
    seed = seed_ref[0]

    @pl.when(j == 0)
    def _init():
        acc_ref[...] = jnp.zeros_like(acc_ref)

    # Linear 1 + ReLU for this hidden-column block (MXU, f32 accumulation).
    h = jnp.dot(x_ref[...], w1_ref[...], preferred_element_type=jnp.float32)
    h = jnp.maximum(h + b1_ref[...].astype(jnp.float32), 0.0)

    # Linear 2 partial product for this hidden block, accumulated in f32.
    acc_ref[...] += jnp.dot(h.astype(w2_ref.dtype), w2_ref[...],
                            preferred_element_type=jnp.float32)

    @pl.when(j == last_j)
    def _finalize():
        y = acc_ref[...] + b2_ref[...].astype(jnp.float32)
        if training and dropout_p > 0.0:
            # Inverted dropout (matches torch.nn.Dropout in train mode):
            # keep with prob (1-p), scale survivors by 1/(1-p).  The mask is a
            # counter hash of the *global* element index (row_off makes the
            # row index global), so it is independent of the tile sizes.
            # TODO(synk): int32 linear index wraps for >2^31 activations;
            # switch to a two-word hash for such sizes.
            rows = jax.lax.broadcasted_iota(jnp.int32, y.shape, 0) + row_off
            cols = jax.lax.broadcasted_iota(jnp.int32, y.shape, 1)
            z = rows * jnp.int32(n_features) + cols
            z = _mix32(z ^ (seed * jnp.int32(0x6A09E667)))
            r = z & jnp.int32(0x7FFFFFFF)                      # uniform in [0, 2^31)
            thr = jnp.int32(min(int(dropout_p * float(1 << 31)), (1 << 31) - 1))
            keep = r >= thr                                    # integer-threshold compare
            y = jnp.where(keep, y * jnp.float32(1.0 / (1.0 - dropout_p)), 0.0)
        o_ref[...] = y.astype(o_ref.dtype)


def _vmem_budget_and_limit():
    """Per-generation VMEM sizing.  Conservative (v7x: 64 MiB/TC) if the
    hardware query is unavailable (e.g. interpret mode)."""
    cap = 64 * 1024 * 1024
    try:
        info = pltpu.get_tpu_info()
        cap = int(getattr(info, "vmem_capacity_bytes", cap) or cap)
    except Exception:
        pass
    limit = max(32 << 20, min(cap - (8 << 20), 120 << 20))   # Mosaic scratch headroom
    budget = max(24 << 20, limit - (8 << 20))                 # what our blocks may use
    return budget, limit


def _vmem_footprint(bm, bh, Cp, x_item, w_item):
    x_io = 2 * (bm * Cp * x_item) * 2            # x + out blocks, double-buffered
    w = 2 * (Cp * bh + bh * Cp) * w_item         # W1 + W2 blocks, double-buffered
    b = 2 * (bh + Cp) * max(w_item, 4)           # biases (tiny)
    acc = bm * Cp * 4                            # f32 accumulator scratch
    h = bm * bh * 4                              # post-ReLU intermediate
    return int(x_io + w + b + acc + h)


def _choose_tiles(M, Cp, H, x_item, w_item, block_rows, block_hidden, budget,
                  weights_resident, sub):
    bm = _round_up(max(1, min(int(block_rows), M)), sub)

    def fits(bm_, bh_):
        return _vmem_footprint(bm_, bh_, Cp, x_item, w_item) <= budget

    # Streaming candidates: 128-multiples that divide H (largest first).
    cands = [d for d in range(128, H, 128) if H % d == 0]
    cands = [d for d in cands if d <= max(128, int(block_hidden))]
    cands.sort(reverse=True)

    def pick_bh(bm_):
        if weights_resident is True:
            return H
        if weights_resident is None and fits(bm_, H):
            return H                 # resident fast path: weights DMA'd once
        for d in cands:
            if fits(bm_, d):
                return d
        return cands[-1] if cands else H

    bh = pick_bh(bm)
    # If even the smallest hidden tile does not fit, shrink the row tile.
    while bm > sub and not fits(bm, bh):
        bm = _round_up(max(sub, bm // 2), sub)
        bh = pick_bh(bm)
    return bm, bh


def feed_forward(x, params, *, seed=0, dropout_p=0.1, training=True,
                 block_rows=512, block_hidden=1024,
                 weights_resident=None, vmem_limit_bytes=None):
    """Pallas implementation of FeedForward.forward for x of shape (..., C).

    block_rows:   row tile.  Keep >= ~256 on v5e, ~512-1024 on v6e, ~384-512
                  on v7x so the streamed-weight schedule stays MXU-bound.
    block_hidden: hidden-dim tile cap when streaming (auto-shrunk to fit the
                  VMEM budget; must not force huge bm*bh f32 intermediates).
    weights_resident: True/False forces / disables the fully-VMEM-resident
                  weights fast path; None = auto (budget-based).
    """
    w1, b1, w2, b2 = params
    orig_shape = x.shape
    C = int(orig_shape[-1])
    H = int(w1.shape[1])
    assert w1.shape == (C, H) and w2.shape == (H, C)
    if training and dropout_p > 0.0:
        assert 0.0 < float(dropout_p) < 1.0, "dropout_p must be in [0, 1)"

    b1 = b1.reshape(1, H)
    b2 = b2.reshape(1, C)

    M = int(np.prod(orig_shape[:-1])) if len(orig_shape) > 1 else 1
    x2d = x.reshape(M, C)

    # Lane-dense embedding dim: pad C to a multiple of 128 (zero rows/cols of
    # the weights keep the math identical; padded outputs are sliced off).
    Cp = _round_up(C, 128)
    if Cp > C:
        x2d = jnp.pad(x2d, ((0, 0), (0, Cp - C)))
        w1 = jnp.pad(w1, ((0, Cp - C), (0, 0)))
        w2 = jnp.pad(w2, ((0, 0), (0, Cp - C)))
        b2 = jnp.pad(b2, ((0, 0), (0, Cp - C)))

    x_item = jnp.dtype(x.dtype).itemsize
    w_item = jnp.dtype(w1.dtype).itemsize
    sub = {4: 8, 2: 16, 1: 32}.get(x_item, 8)     # dtype sublane multiple

    budget, limit = _vmem_budget_and_limit()
    if vmem_limit_bytes is not None:
        limit = int(vmem_limit_bytes)
        budget = max(16 << 20, limit - (8 << 20))

    bm, bh = _choose_tiles(M, Cp, H, x_item, w_item, block_rows, block_hidden,
                           budget, weights_resident, sub)
    num_h = H // bh          # bh always divides H by construction

    Mp = _round_up(M, bm)
    if Mp > M:
        x2d = jnp.pad(x2d, ((0, Mp - M), (0, 0)))
    row_tiles = Mp // bm

    seed_arr = jnp.array([seed], dtype=jnp.int32)

    kernel = functools.partial(
        _ffn_kernel,
        dropout_p=float(dropout_p),
        training=bool(training),
        n_features=Cp,
        block_rows=bm)

    # Streamed weights are re-read once per row tile; resident weights once.
    w_reads = 1 if (bh == H or row_tiles == 1) else row_tiles
    cost = pl.CostEstimate(
        flops=4 * Mp * Cp * H,                     # two matmuls, 2 flops/MAC
        transcendentals=0,
        bytes_accessed=int(2 * Mp * Cp * x_item
                           + w_reads * (Cp * H + H * Cp) * w_item
                           + (H + Cp) * jnp.dtype(b1.dtype).itemsize))

    out = pl.pallas_call(
        kernel,
        out_shape=jax.ShapeDtypeStruct((Mp, Cp), x.dtype),
        grid=(row_tiles, num_h),
        in_specs=[
            pl.BlockSpec(memory_space=pltpu.MemorySpace.SMEM),   # seed scalar
            pl.BlockSpec((bm, Cp), lambda i, j: (i, 0)),         # x rows (resident over j)
            pl.BlockSpec((Cp, bh), lambda i, j: (0, j)),         # W1 column block
            pl.BlockSpec((1, bh), lambda i, j: (0, j)),          # b1 block
            pl.BlockSpec((bh, Cp), lambda i, j: (j, 0)),         # W2 row block
            pl.BlockSpec((1, Cp), lambda i, j: (0, 0)),          # b2
        ],
        out_specs=pl.BlockSpec((bm, Cp), lambda i, j: (i, 0)),   # resident over j
        scratch_shapes=[pltpu.VMEM((bm, Cp), jnp.float32)],      # f32 accumulator
        compiler_params=pltpu.CompilerParams(
            dimension_semantics=("parallel", "arbitrary"),       # rows across TCs
            vmem_limit_bytes=int(limit)),
        cost_estimate=cost,
    )(seed_arr, x2d, w1, b1, w2, b2)

    return out[:M, :C].reshape(orig_shape)


def init_params(key, n_embd, dtype=jnp.float32):
    """Matches nn.Linear default init (uniform +/- 1/sqrt(fan_in)).

    Weights are stored transposed vs PyTorch ((in, out) instead of (out, in))
    so the kernel can do x @ W directly.
    """
    hidden = 4 * n_embd
    k1 = 1.0 / float(n_embd) ** 0.5
    k2 = 1.0 / float(hidden) ** 0.5
    k_w1, k_b1, k_w2, k_b2 = jax.random.split(key, 4)
    w1 = jax.random.uniform(k_w1, (n_embd, hidden), dtype, -k1, k1)
    b1 = jax.random.uniform(k_b1, (1, hidden), dtype, -k1, k1)
    w2 = jax.random.uniform(k_w2, (hidden, n_embd), dtype, -k2, k2)
    b2 = jax.random.uniform(k_b2, (1, n_embd), dtype, -k2, k2)
    return w1, b1, w2, b2


def _reference_eval(x, params):
    """Pure-JAX reference (eval mode: dropout is identity)."""
    w1, b1, w2, b2 = params
    h = jnp.maximum(x @ w1 + b1, 0.0)
    return h @ w2 + b2


if __name__ == "__main__":
    n_embd = 128          # hidden = 512 (lane-dense: both multiples of 128)
    batch, seq = 2, 8     # B*T = 16 token rows

    root = jax.random.PRNGKey(0)
    k_param, k_x = jax.random.split(root)
    params = init_params(k_param, n_embd)
    x = jax.random.normal(k_x, (batch, seq, n_embd), dtype=jnp.float32)

    y_ref = _reference_eval(x.reshape(-1, n_embd), params).reshape(x.shape)

    # 1) Eval mode, forced streamed-weight schedule (2 hidden tiles) so the
    #    f32 accumulator + pl.when init/finalize path is exercised.
    y_eval = feed_forward(x, params, training=False,
                          block_hidden=256, weights_resident=False)
    jax.block_until_ready(y_eval)
    assert y_eval.shape == x.shape and y_eval.dtype == x.dtype
    assert jnp.allclose(y_eval, y_ref, rtol=2e-2, atol=2e-2), "streamed eval mismatch"

    # 2) Eval mode, auto tiling (weights fully VMEM-resident: single weight DMA).
    y_eval_res = feed_forward(x, params, training=False)
    jax.block_until_ready(y_eval_res)
    assert jnp.allclose(y_eval_res, y_ref, rtol=2e-2, atol=2e-2), "resident eval mismatch"

    # 3) Train mode: in-kernel dropout.  Every output must be either exactly 0
    #    (dropped) or the eval output scaled by 1/(1-p) (kept).
    p = 0.1
    y_train = feed_forward(x, params, seed=123, dropout_p=p, training=True,
                           block_hidden=256, weights_resident=False)
    jax.block_until_ready(y_train)
    assert y_train.shape == x.shape and y_train.dtype == x.dtype
    scaled = y_eval / (1.0 - p)
    consistent = jnp.isclose(y_train, 0.0, atol=1e-6) | jnp.isclose(
        y_train, scaled, rtol=1e-4, atol=1e-5)
    assert bool(jnp.all(consistent)), "train-mode output inconsistent with inverted dropout"
    frac_zero = float(jnp.mean(jnp.isclose(y_train, 0.0, atol=1e-6)))
    assert 0.0 < frac_zero < 0.5, f"dropout fraction looks wrong: {frac_zero}"

    # 4) bf16 path (native MXU dtype, halves weight VMEM/HBM traffic).
    xb = x.astype(jnp.bfloat16)
    params_bf16 = tuple(w.astype(jnp.bfloat16) for w in params)
    y_bf16 = feed_forward(xb, params_bf16, training=False)
    jax.block_until_ready(y_bf16)
    assert y_bf16.shape == x.shape and y_bf16.dtype == jnp.bfloat16

    print("KERNEL_OK")
</pallas_src>

<mosaic_0001>
module attributes {stable_mosaic.version = 11 : i64} {
  func.func @_ffn_kernel(%arg0: i32, %arg1: i32, %arg2: memref<1xi32, #tpu.memory_space<smem>>, %arg3: memref<16x128xf32, #tpu.memory_space<vmem>>, %arg4: memref<128x256xf32, #tpu.memory_space<vmem>>, %arg5: memref<1x256xf32, #tpu.memory_space<vmem>>, %arg6: memref<256x128xf32, #tpu.memory_space<vmem>>, %arg7: memref<1x128xf32, #tpu.memory_space<vmem>>, %arg8: memref<16x128xf32, #tpu.memory_space<vmem>>, %arg9: memref<16x128xf32, #tpu.memory_space<vmem>>) attributes {dimension_semantics = [#tpu.dimension_semantics<parallel>, #tpu.dimension_semantics<arbitrary>], iteration_bounds = array<i64: 1, 2>, scalar_prefetch = 0 : i64, scratch_operands = 1 : i64, tpu.core_type = #tpu.core_type<tc>, window_params = [{transform_indices = @transform_0, window_bounds = array<i64: 1>}, {transform_indices = @transform_1, window_bounds = array<i64: 16, 128>}, {transform_indices = @transform_2, window_bounds = array<i64: 128, 256>}, {transform_indices = @transform_3, window_bounds = array<i64: 1, 256>}, {transform_indices = @transform_4, window_bounds = array<i64: 256, 128>}, {pipeline_mode = #tpu.pipeline_mode<synchronous>, transform_indices = @transform_5, window_bounds = array<i64: 1, 128>}, {transform_indices = @transform_6, window_bounds = array<i64: 16, 128>}]} {
    %c0_i32 = arith.constant 0 : i32
    %0 = arith.cmpi eq, %arg1, %c0_i32 : i32
    %1 = arith.extui %0 : i1 to i32
    %c0_i32_0 = arith.constant 0 : i32
    %2 = arith.cmpi ne, %1, %c0_i32_0 : i32
    scf.if %2 {
      %cst_15 = arith.constant 0.000000e+00 : f32
      %19 = vector.broadcast %cst_15 : f32 to vector<16x128xf32>
      %c0_16 = arith.constant 0 : index
      %c0_17 = arith.constant 0 : index
      %20 = vector.load %arg9[%c0_16, %c0_17] : memref<16x128xf32, #tpu.memory_space<vmem>>, vector<16x128xf32>
      tpu.vector_store %arg9[%c0_16, %c0_17], %19 {strides = array<i32>} : memref<16x128xf32, #tpu.memory_space<vmem>>, vector<16x128xf32>,
    } else {
    }
    %c0 = arith.constant 0 : index
    %c0_1 = arith.constant 0 : index
    %3 = vector.load %arg3[%c0, %c0_1] : memref<16x128xf32, #tpu.memory_space<vmem>>, vector<16x128xf32>
    %c0_2 = arith.constant 0 : index
    %c0_3 = arith.constant 0 : index
    %4 = vector.load %arg4[%c0_2, %c0_3] : memref<128x256xf32, #tpu.memory_space<vmem>>, vector<128x256xf32>
    %cst = arith.constant dense<0.000000e+00> : vector<16x256xf32>
    %5 = tpu.matmul %3, %4, %cst {dimension_numbers = #tpu.dot_dimension_numbers<[1], [0], [0], [1], [0, 0, 1, 1], [], []>} : vector<16x128xf32>, vector<128x256xf32>, vector<16x256xf32> -> vector<16x256xf32>
    %c0_4 = arith.constant 0 : index
    %c0_5 = arith.constant 0 : index
    %6 = vector.load %arg5[%c0_4, %c0_5] : memref<1x256xf32, #tpu.memory_space<vmem>>, vector<1x256xf32>
    %7 = vector.broadcast %6 : vector<1x256xf32> to vector<16x256xf32>
    %8 = arith.addf %5, %7 : vector<16x256xf32>
    %cst_6 = arith.constant 0.000000e+00 : f32
    %9 = vector.broadcast %cst_6 : f32 to vector<16x256xf32>
    %10 = arith.maximumf %8, %9 : vector<16x256xf32>
    %c0_7 = arith.constant 0 : index
    %c0_8 = arith.constant 0 : index
    %11 = vector.load %arg9[%c0_7, %c0_8] : memref<16x128xf32, #tpu.memory_space<vmem>>, vector<16x128xf32>
    %c0_9 = arith.constant 0 : index
    %c0_10 = arith.constant 0 : index
    %12 = vector.load %arg6[%c0_9, %c0_10] : memref<256x128xf32, #tpu.memory_space<vmem>>, vector<256x128xf32>
    %cst_11 = arith.constant dense<0.000000e+00> : vector<16x128xf32>
    %13 = tpu.matmul %10, %12, %cst_11 {dimension_numbers = #tpu.dot_dimension_numbers<[1], [0], [0], [1], [0, 0, 1, 1], [], []>} : vector<16x256xf32>, vector<256x128xf32>, vector<16x128xf32> -> vector<16x128xf32>
    %14 = arith.addf %11, %13 : vector<16x128xf32>
    %c0_12 = arith.constant 0 : index
    %c0_13 = arith.constant 0 : index
    %15 = vector.load %arg9[%c0_12, %c0_13] : memref<16x128xf32, #tpu.memory_space<vmem>>, vector<16x128xf32>
    tpu.vector_store %arg9[%c0_12, %c0_13], %14 {strides = array<i32>} : memref<16x128xf32, #tpu.memory_space<vmem>>, vector<16x128xf32>,
    %c1_i32 = arith.constant 1 : i32
    %16 = arith.cmpi eq, %arg1, %c1_i32 : i32
    %17 = arith.extui %16 : i1 to i32
    %c0_i32_14 = arith.constant 0 : i32
    %18 = arith.cmpi ne, %17, %c0_i32_14 : i32
    scf.if %18 {
      %c0_15 = arith.constant 0 : index
      %c0_16 = arith.constant 0 : index
      %19 = vector.load %arg9[%c0_15, %c0_16] : memref<16x128xf32, #tpu.memory_space<vmem>>, vector<16x128xf32>
      %c0_17 = arith.constant 0 : index
      %c0_18 = arith.constant 0 : index
      %20 = vector.load %arg7[%c0_17, %c0_18] : memref<1x128xf32, #tpu.memory_space<vmem>>, vector<1x128xf32>
      %21 = vector.broadcast %20 : vector<1x128xf32> to vector<16x128xf32>
      %22 = arith.addf %19, %21 : vector<16x128xf32>
      %c0_19 = arith.constant 0 : index
      %c0_20 = arith.constant 0 : index
      %23 = vector.load %arg8[%c0_19, %c0_20] : memref<16x128xf32, #tpu.memory_space<vmem>>, vector<16x128xf32>
      tpu.vector_store %arg8[%c0_19, %c0_20], %22 {strides = array<i32>} : memref<16x128xf32, #tpu.memory_space<vmem>>, vector<16x128xf32>,
    } else {
    }
    return
  }
  func.func @transform_0(%arg0: i32, %arg1: i32) -> i32 {
    %c0_i32 = arith.constant 0 : i32
    %c0_i32_0 = arith.constant 0 : i32
    return %c0_i32 : i32
  }
  func.func @transform_1(%arg0: i32, %arg1: i32) -> (i32, i32) {
    %c0_i32 = arith.constant 0 : i32
    %c0_i32_0 = arith.constant 0 : i32
    return %arg0, %c0_i32 : i32, i32
  }
  func.func @transform_2(%arg0: i32, %arg1: i32) -> (i32, i32) {
    %c0_i32 = arith.constant 0 : i32
    %c0_i32_0 = arith.constant 0 : i32
    return %c0_i32, %arg1 : i32, i32
  }
  func.func @transform_3(%arg0: i32, %arg1: i32) -> (i32, i32) {
    %c0_i32 = arith.constant 0 : i32
    %c0_i32_0 = arith.constant 0 : i32
    return %c0_i32, %arg1 : i32, i32
  }
  func.func @transform_4(%arg0: i32, %arg1: i32) -> (i32, i32) {
    %c0_i32 = arith.constant 0 : i32
    %c0_i32_0 = arith.constant 0 : i32
    return %arg1, %c0_i32 : i32, i32
  }
  func.func @transform_5(%arg0: i32, %arg1: i32) -> (i32, i32) {
    %c0_i32 = arith.constant 0 : i32
    %c0_i32_0 = arith.constant 0 : i32
    %c0_i32_1 = arith.constant 0 : i32
    return %c0_i32, %c0_i32_0 : i32, i32
  }
  func.func @transform_6(%arg0: i32, %arg1: i32) -> (i32, i32) {
    %c0_i32 = arith.constant 0 : i32
    %c0_i32_0 = arith.constant 0 : i32
    return %arg0, %c0_i32 : i32, i32
  }
}

</mosaic_0001>

<bundles_post_ra>
// kernel: tpu_custom_call.1
= control target key start
LH: loop header
LB: loop body
LE: loop exit
PB: predicated region body
PF: predicated region fallthrough
CT: control target
= control target key end

     0   :  { %s1313_s0 = inlined_call_operand.<no memory space> [shape: s32[1], index: 0, kind: input, shape index: {}]   ;;  %s1314_s1 = inlined_call_operand.hbm [shape: f32[16,128], index: 1, kind: input, shape index: {}]   ;;  %s1315_s2 = inlined_call_operand.hbm [shape: f32[128,512], index: 2, kind: input, shape index: {}]   ;;  %s1316_s3 = inlined_call_operand.hbm [shape: f32[1,512], index: 3, kind: input, shape index: {}]   ;;  %s1317_s4 = inlined_call_operand.hbm [shape: f32[512,128], index: 4, kind: input, shape index: {}]   ;;  %s1318_s5 = inlined_call_operand.vmem [shape: f32[1,128], index: 5, kind: input, shape index: {}]   ;;  %s1319_s6 = inlined_call_operand.hbm [shape: f32[16,128], index: 6, kind: output, shape index: {}]  }
   0x1   :  { %1324 = sst [smem:[#allocation21_spill]] %s1314_s1 }
   0x2   :  { %1325 = sst [smem:[#allocation22_spill]] %s1315_s2 }
   0x3   :  { %12 = vsyncpa [#allocation5], 0 }
   0x4   :  { %13 = vsyncpa [#allocation8], 0 }
   0x5   :  { %15 = vsyncpa [#allocation8 + $0x1], 0 }
   0x6   :  { %16 = vsyncpa [#allocation11], 0 }
   0x7   :  { %18 = vsyncpa [#allocation11 + $0x1], 0 }
   0x8   :  { %19 = vsyncpa [#allocation6], 0  ;;  %s1086_s0 = smov 0   ;;  %s1088_s21 = smov 0  }
   0x9   :  { %s1090_s22 = smov 0   ;;  %s1092_s23 = smov 0  }
   0xa   :  { %s1094_s24 = smov 0   ;;  %s1096_s25 = smov 0  }
   0xb LB: > { %1326 = sst [smem:[#allocation17_spill]] %s1027_s22  ;;  %s34_s26 = sadd.s32 1, %s1035_s24  ;;  %s1039_s25 = sphi %s1096_s25, %s25_s25   ;;  %s1035_s24 = sphi %s1094_s24, %s1344_s24   ;;  %s1031_s23 = sphi %s1092_s23, %s1343_s23   ;;  %s1027_s22 = sphi %s1090_s22, %s1339_s22   ;;  %s1023_s21 = sphi %s1088_s21, %s1342_s21   ;;  %s1019_s0 = sphi %s1086_s0, %s1341_s0  }
   0xc   : > { %1327 = sst [smem:[#allocation18_spill]] %s1039_s25  ;;  %s91_s27 = sadd.s32 1, %s1027_s22 }
   0xd   : > { %p35_p0 = scmp.ge.s32.totalorder %s34_s26, 2  ;;  %p98_p1 = scmp.ne.s32.totalorder %s1027_s22, %s1023_s21 }
   0xe   : > { %p99_p2 = scmp.eq.s32.totalorder %s1039_s25, 0  ;;  %p766_p4 = scmp.lt.s32.totalorder %s1039_s25, 2 }
   0xf   : > { %s1346_s26 = smov (%p35_p0, %s34_s26), 0  ;;  %s250_s30 = sand.u32 1, %s1039_s25  }
  0x10   : > { %1328 = sst [smem:[#allocation19_spill]] %s1346_s26  ;;  %p1123_p3 = por %p99_p2, %p98_p1 }
  0x11   : > { %s88_s29 = ssub.s32 %s1035_s24, %s1346_s26  ;;  %s1132_s7 = sand.u32 1, %s1027_s22  }
  0x12   : > { %p89_p5 = scmp.eq.s32.totalorder %s88_s29, 0  ;;  %s735_s8 = sshll.u32 %s1035_s24, 4 }
  0x13   : > { %s1320_s10 = sshll.u32 %s1132_s7, 8  ;;  %s1331_s2 = sld [smem:[#allocation22_spill]] }
  0x14   : > { %s1136_s9 = scalar_select %p89_p5, %s1027_s22, %s91_s27  }
  0x15   : > { %s254_s15 = scalar_lea.vmem [#allocation7], %s1320_s10  ;;  %p1148_p6 = pnand %p766_p4, %p1123_p3 }
  0x16   : > { %1330 = sst [smem:[#allocation20_spill]] %s1136_s9  ;;  %s262_s16 = sshll.u32 %s254_s15, 4  ;;  %s263_s16 = int_to_ptr.vmem [resolvable:$true] %s262_s16 }
  0x17   : > { %s1152_s18 = scalar_lea.sflag [#allocation8], %s250_s30  ;;  %s1041_s19 = smov 512  }
  0x18   : > { %s1042_s20 = smov 256   ;;  %s1043_s27 = smov 16  }
  0x19   : > { %s259_s13 = scalar_lea.hbm %s1331_s2, %s735_s8  ;;  %s1158_s29 = sadd.s32 4294967295, %s1039_s25  }
  0x1a   : > { %s260_s14 = sshll.u32 %s259_s13, 4  ;;  %p104_p7 = scmp.ne.s32.totalorder %s1023_s21, %s1019_s0  ;;  %s261_s14 = int_to_ptr.hbm [resolvable:$true] %s260_s14 }
  0x1b   : > { %758 = dma.hbm_to_vmem [thread:$0]  (!%p1148_p6), %s261_s14, 4096, %s263_s16, %s1152_s18, %s1041_s19, %s1042_s20, %s1043_s27  }
  0x1c   : > { %p105_p8 = scmp.eq.s32.totalorder %s1158_s29, 0  ;;  %p713_p9 = scmp.ge.s32.totalorder %s1039_s25, 1 }
  0x1d   : > { %p214_p10 = scmp.lt.s32.totalorder %s1039_s25, 3  ;;  %s1334_s1 = sld [smem:[#allocation21_spill]] }
  0x1e   : > { %p1167_p11 = por %p105_p8, %p104_p7  ;;  %s1044_s0 = smov [#allocation4]  }
  0x1f   : > { %p1174_p12 = pnand %p713_p9, %p214_p10  ;;  %s233_s13 = sshll.u32 %s1044_s0, 4  ;;  %s234_s13 = int_to_ptr.vmem [resolvable:$true] %s233_s13 }
  0x20   : > { %s719_s14 = sshll.u32 %s1132_s7, 1  ;;  %s720_s15 = sshll.u32 %s1035_s24, 1 }
  0x21   : > { %p751_p13 = pneg %p1174_p12  ;;  %s280_s20 = scalar_lea.hbm %s1316_s3, %s720_s15 }
  0x22   : > { %s1045_s27 = smov 128   ;;  %s1046_s30 = smov 8  }
  0x23   : > { %s231_s11 = sshll.u32 %s1334_s1, 4  ;;  %p752_p0 = pnand %p751_p13, %p105_p8  ;;  %s232_s11 = int_to_ptr.hbm [resolvable:$true] %s231_s11 }
  0x24   : > { %s282_s8 = sshll.u32 %s280_s20, 4  ;;  %s276_s10 = scalar_lea.vmem [#allocation9], %s719_s14  ;;  %s283_s8 = int_to_ptr.hbm [resolvable:$true] %s282_s8 }
  0x25   : > { %754 = dma.hbm_to_vmem [thread:$0]  (!%p752_p0), %s232_s11, 256, %s234_s13, [#allocation5], %s1045_s27, %s1045_s27, %s1046_s30  }
  0x26   : > { %s284_s1 = sshll.u32 %s276_s10, 4  ;;  %s736_s0 = sshll.u32 %s1035_s24, 8  ;;  %s285_s1 = int_to_ptr.vmem [resolvable:$true] %s284_s1 }
  0x27   : > { %761 = dma.hbm_to_vmem [thread:$0]  (!%p1148_p6), %s283_s8, 32, %s285_s1, %s1152_s18  }
  0x28   : > { %s1336_s2 = sshll.u32 %s1132_s7, 8  ;;  %s300_s15 = scalar_lea.hbm %s1317_s4, %s736_s0 }
  0x29   : > { %s295_s26 = scalar_lea.vmem [#allocation10], %s1336_s2  ;;  %s301_s16 = sshll.u32 %s300_s15, 4  ;;  %s302_s16 = int_to_ptr.hbm [resolvable:$true] %s301_s16 }
  0x2a   : > { %s303_s9 = sshll.u32 %s295_s26, 4  ;;  %s292_s19 = scalar_lea.sflag [#allocation11], %s1132_s7  ;;  %s304_s9 = int_to_ptr.vmem [resolvable:$true] %s303_s9 }
  0x2b   : > { %764 = dma.hbm_to_vmem [thread:$0]  (!%p1148_p6), %s302_s16, 4096, %s304_s9, %s292_s19, %s1045_s27, %s1045_s27, %s1046_s30  }
  0x2c   : > { %315 = sbr.rel (%p1174_p12) target bundleno = 390 (0x186), region = 44 }
  0x31   : > { %1002 = dma.done.wait (%p105_p8), [#allocation5], 256  }
  0x32   : > { %1004 = vsyncadd (%p105_p8), [#allocation5], 4294967040  ;;  %s322_s1 = sand.u32 1, %s1158_s29   ;;  %s324_s2 = sand.u32 1, %s1023_s21  }
  0x33   : > { %s726_s22 = sshll.u32 %s324_s2, 8  ;;  %s323_s25 = scalar_lea.sflag [#allocation8], %s322_s1 }
  0x34   : > { %s1207_s26 = scalar_lea.vmem [#allocation7], %s726_s22 }
  0x35   : > { %1006 = dma.done.wait (%p1167_p11), %s323_s25, 4128  }
  0x36   : > { %1008 = vsyncadd (%p1167_p11), %s323_s25, 4294963168  ;;  %s727_s7 = sshll.u32 %s324_s2, 1  ;;  %s343_s10 = scalar_lea.sflag [#allocation11], %s324_s2 }
  0x37   : > { %s1213_s9 = scalar_lea.vmem [#allocation9], %s727_s7  ;;  %s1215_s17 = scalar_lea.vmem [#allocation10], %s726_s22 }
  0x38   : > { %1010 = dma.done.wait (%p1167_p11), %s343_s10, 4096  }
  0x39   : > { %1012 = vsyncadd (%p1167_p11), %s343_s10, 4294963200  ;;  %p729_p1 = scmp.ne.s32.totalorder %s1031_s23, 0 }
  0x3b   : > { %389 = sbr.rel (%p729_p1) target bundleno = 67 (0x43), region = 64 }
  0x40   : > { %v1047_v0 = vmov 0.0  }
  0x41   : > { %390 = vst [vmem:[#allocation2] sm:$0xff] %v1047_v0 }
  0x42   : > { %391 = vst [vmem:[#allocation2 + $0x8] sm:$0xff] %v1047_v0 }
  0x43 PF: > { %v424_v1 = vld [vmem:[%s1207_s26 + $0xf0] sm:$0xff]  ;;  %v425_v2 = vld [vmem:[%s1207_s26 + $0xf8] sm:$0xff]  ;;  %v422_v3 = vld [vmem:[%s1207_s26 + $0xe0] sm:$0xff]  ;;  %p730_p2 = scmp.ne.s32.totalorder %s1031_s23, 1 }
  0x44   : > { %432 = vmatpush.msra.mxu0 %v424_v1  ;;  %455 = vmatpush.msra.mxu1 %v425_v2  ;;  %v423_v4 = vld [vmem:[%s1207_s26 + $0xe8] sm:$0xff]  ;;  %v420_v5 = vld [vmem:[%s1207_s26 + $0xd0] sm:$0xff]  ;;  %v421_v6 = vld [vmem:[%s1207_s26 + $0xd8] sm:$0xff] }
  0x45   : > { %v418_v7 = vld [vmem:[%s1207_s26 + $0xc0] sm:$0xff]  ;;  %v419_v8 = vld [vmem:[%s1207_s26 + $0xc8] sm:$0xff]  ;;  %v416_v9 = vld [vmem:[%s1207_s26 + $0xb0] sm:$0xff] }
  0x46   : > { %433 = vmatpush.msra.mxu0 %v422_v3  ;;  %456 = vmatpush.msra.mxu1 %v423_v4  ;;  %v417_v10 = vld [vmem:[%s1207_s26 + $0xb8] sm:$0xff]  ;;  %v414_v11 = vld [vmem:[%s1207_s26 + $0xa0] sm:$0xff]  ;;  %v415_v12 = vld [vmem:[%s1207_s26 + $0xa8] sm:$0xff] }
  0x47   : > { %v412_v13 = vld [vmem:[%s1207_s26 + $0x90] sm:$0xff]  ;;  %v413_v14 = vld [vmem:[%s1207_s26 + $0x98] sm:$0xff]  ;;  %v410_v15 = vld [vmem:[%s1207_s26 + $0x80] sm:$0xff] }
  0x48   : > { %434 = vmatpush.msra.mxu0 %v420_v5  ;;  %457 = vmatpush.msra.mxu1 %v421_v6  ;;  %v499_v16 = vld [vmem:[%s1215_s17 + $0x78] sm:$0xff]  ;;  %v411_v18 = vld [vmem:[%s1207_s26 + $0x88] sm:$0xff]  ;;  %v498_v19 = vld [vmem:[%s1215_s17 + $0x70] sm:$0xff] }
  0x49   : > { %v515_v17 = vld [vmem:[%s1215_s17 + $0xf8] sm:$0xff]  ;;  %516 = vmatpush.msra.mxu2 %v499_v16  ;;  %v514_v20 = vld [vmem:[%s1215_s17 + $0xf0] sm:$0xff]  ;;  %v497_v21 = vld [vmem:[%s1215_s17 + $0x68] sm:$0xff] }
  0x4a   : > { %435 = vmatpush.msra.mxu0 %v418_v7  ;;  %458 = vmatpush.msra.mxu1 %v419_v8  ;;  %v513_v22 = vld [vmem:[%s1215_s17 + $0xe8] sm:$0xff]  ;;  %v409_v24 = vld [vmem:[%s1207_s26 + $0x78] sm:$0xff]  ;;  %v496_v25 = vld [vmem:[%s1215_s17 + $0x60] sm:$0xff] }
  0x4b   : > { %539 = vmatpush.msra.mxu3 %v515_v17  ;;  %v408_v23 = vld [vmem:[%s1207_s26 + $0x70] sm:$0xff]  ;;  %517 = vmatpush.msra.mxu2 %v498_v19  ;;  %v512_v26 = vld [vmem:[%s1215_s17 + $0xe0] sm:$0xff]  ;;  %v495_v29 = vld [vmem:[%s1215_s17 + $0x58] sm:$0xff] }
  0x4c   : > { %436 = vmatpush.msra.mxu0 %v416_v9  ;;  %459 = vmatpush.msra.mxu1 %v417_v10  ;;  %v406_v27 = vld [vmem:[%s1207_s26 + $0x60] sm:$0xff]  ;;  %v407_v28 = vld [vmem:[%s1207_s26 + $0x68] sm:$0xff]  ;;  %v404_v31 = vld [vmem:[%s1207_s26 + $0x50] sm:$0xff] }
  0x4d   : > { %540 = vmatpush.msra.mxu3 %v514_v20  ;;  %518 = vmatpush.msra.mxu2 %v497_v21  ;;  %v511_v30 = vld [vmem:[%s1215_s17 + $0xd8] sm:$0xff]  ;;  %v494_v33 = vld [vmem:[%s1215_s17 + $0x50] sm:$0xff]  ;;  %v403_v36 = vld [vmem:[%s1207_s26 + $0x48] sm:$0xff] }
  0x4e   : > { %437 = vmatpush.msra.mxu0 %v414_v11  ;;  %460 = vmatpush.msra.mxu1 %v415_v12  ;;  %v405_v32 = vld [vmem:[%s1207_s26 + $0x58] sm:$0xff]  ;;  %v402_v35 = vld [vmem:[%s1207_s26 + $0x40] sm:$0xff]  ;;  %v493_v37 = vld [vmem:[%s1215_s17 + $0x48] sm:$0xff] }
  0x4f   : > { %541 = vmatpush.msra.mxu3 %v513_v22  ;;  %519 = vmatpush.msra.mxu2 %v496_v25  ;;  %v510_v34 = vld [vmem:[%s1215_s17 + $0xd0] sm:$0xff]  ;;  %v509_v38 = vld [vmem:[%s1215_s17 + $0xc8] sm:$0xff]  ;;  %v492_v41 = vld [vmem:[%s1215_s17 + $0x40] sm:$0xff] }
  0x50   : > { %438 = vmatpush.msra.mxu0 %v412_v13  ;;  %461 = vmatpush.msra.mxu1 %v413_v14  ;;  %v400_v39 = vld [vmem:[%s1207_s26 + $0x30] sm:$0xff]  ;;  %v401_v40 = vld [vmem:[%s1207_s26 + $0x38] sm:$0xff]  ;;  %v508_v42 = vld [vmem:[%s1215_s17 + $0xc0] sm:$0xff] }
  0x51   : > { %542 = vmatpush.msra.mxu3 %v512_v26  ;;  %520 = vmatpush.msra.mxu2 %v495_v29  ;;  %v398_v43 = vld [vmem:[%s1207_s26 + $0x20] sm:$0xff]  ;;  %v399_v44 = vld [vmem:[%s1207_s26 + $0x28] sm:$0xff]  ;;  %v396_v47 = vld [vmem:[%s1207_s26 + $0x10] sm:$0xff] }
  0x52   : > { %439 = vmatpush.msra.mxu0 %v410_v15  ;;  %462 = vmatpush.msra.mxu1 %v411_v18  ;;  %v491_v45 = vld [vmem:[%s1215_s17 + $0x38] sm:$0xff]  ;;  %v490_v49 = vld [vmem:[%s1215_s17 + $0x30] sm:$0xff]  ;;  %v395_v52 = vld [vmem:[%s1207_s26 + $0x8] sm:$0xff] }
  0x53   : > { %543 = vmatpush.msra.mxu3 %v511_v30  ;;  %521 = vmatpush.msra.mxu2 %v494_v33  ;;  %v507_v46 = vld [vmem:[%s1215_s17 + $0xb8] sm:$0xff]  ;;  %v506_v50 = vld [vmem:[%s1215_s17 + $0xb0] sm:$0xff]  ;;  %v489_v54 = vld [vmem:[%s1215_s17 + $0x28] sm:$0xff] }
  0x54   : > { %440 = vmatpush.msra.mxu0 %v408_v23  ;;  %463 = vmatpush.msra.mxu1 %v409_v24  ;;  %v397_v48 = vld [vmem:[%s1207_s26 + $0x18] sm:$0xff]  ;;  %v394_v51 = vld [vmem:[%s1207_s26] sm:$0xff]  ;;  %v392_v53 = vld [vmem:[#allocation4] sm:$0xff] }
  0x55   : > { %544 = vmatpush.msra.mxu3 %v510_v34  ;;  %522 = vmatpush.msra.mxu2 %v493_v37  ;;  %v505_v55 = vld [vmem:[%s1215_s17 + $0xa8] sm:$0xff]  ;;  %v488_v56 = vld [vmem:[%s1215_s17 + $0x20] sm:$0xff]  ;;  %v487_v58 = vld [vmem:[%s1215_s17 + $0x18] sm:$0xff] }
  0x56   : > { %441 = vmatpush.msra.mxu0 %v406_v27  ;;  %464 = vmatpush.msra.mxu1 %v407_v28  ;;  %v504_v57 = vld [vmem:[%s1215_s17 + $0xa0] sm:$0xff]  ;;  %v503_v59 = vld [vmem:[%s1215_s17 + $0x98] sm:$0xff]  ;;  %v486_v61 = vld [vmem:[%s1215_s17 + $0x10] sm:$0xff] }
  0x57   : > { %545 = vmatpush.msra.mxu3 %v509_v38  ;;  %523 = vmatpush.msra.mxu2 %v492_v41  ;;  %v393_v60 = vld [vmem:[#allocation4 + $0x8] sm:$0xff]  ;;  %v485_v63 = vld [vmem:[%s1215_s17 + $0x8] sm:$0xff]  ;;  %v484_v1 = vld [vmem:[%s1215_s17] sm:$0xff] }
  0x58   : > { %442 = vmatpush.msra.mxu0 %v404_v31  ;;  %465 = vmatpush.msra.mxu1 %v405_v32  ;;  %v502_v62 = vld [vmem:[%s1215_s17 + $0x90] sm:$0xff]  ;;  %v501_v0 = vld [vmem:[%s1215_s17 + $0x88] sm:$0xff]  ;;  %v500_v2 = vld [vmem:[%s1215_s17 + $0x80] sm:$0xff] }
  0x59   : > { %546 = vmatpush.msra.mxu3 %v508_v42  ;;  %524 = vmatpush.msra.mxu2 %v491_v45  ;;  %v426_v3 = vld [vmem:[%s1213_s9] sm:$0x3]  ;;  %v483_v24 = vld [vmem:[#allocation2 + $0x8] sm:$0xff] }
  0x5a   : > { %443 = vmatpush.msra.mxu0 %v402_v35  ;;  %466 = vmatpush.msra.mxu1 %v403_v36  ;;  %v428_v4 = vperm.slane %v426_v3, 0  ;;  %v429_v5 = vperm.slane %v426_v3, 1  ;;  %v482_v19 = vld [vmem:[#allocation2] sm:$0xff] }
  0x5b   : > { %547 = vmatpush.msra.mxu3 %v507_v46  ;;  %525 = vmatpush.msra.mxu2 %v490_v49 }
  0x5c   : > { %444 = vmatpush.msra.mxu0 %v400_v39  ;;  %467 = vmatpush.msra.mxu1 %v401_v40 }
  0x5d   : > { %548 = vmatpush.msra.mxu3 %v506_v50  ;;  %526 = vmatpush.msra.mxu2 %v489_v54 }
  0x5e   : > { %445 = vmatpush.msra.mxu0 %v398_v43  ;;  %468 = vmatpush.msra.mxu1 %v399_v44 }
  0x5f   : > { %549 = vmatpush.msra.mxu3 %v505_v55  ;;  %527 = vmatpush.msra.mxu2 %v488_v56 }
  0x60   : > { %446 = vmatpush.msra.mxu0 %v396_v47  ;;  %469 = vmatpush.msra.mxu1 %v397_v48 }
  0x61   : > { %550 = vmatpush.msra.mxu3 %v504_v57  ;;  %528 = vmatpush.msra.mxu2 %v487_v58 }
  0x62   : > { %447 = vmatpush.msra.mxu0 %v394_v51  ;;  %470 = vmatpush.msra.mxu1 %v395_v52 }
  0x63   : > { %448 = vmatmul.f32.vlgmr.msra.gmra.mxu0 %v392_v53  ;;  %471 = vmatmul.f32.vlgmr.msra.gmra.mxu1 %v392_v53 }
  0x64   : > { %551 = vmatpush.msra.mxu3 %v503_v59  ;;  %529 = vmatpush.msra.mxu2 %v486_v61 }
  0x66   : > { %552 = vmatpush.msra.mxu3 %v502_v62  ;;  %530 = vmatpush.msra.mxu2 %v485_v63 }
  0x68   : > { %553 = vmatpush.msra.mxu3 %v501_v0  ;;  %531 = vmatpush.msra.mxu2 %v484_v1 }
  0x6a   : > { %554 = vmatpush.msra.mxu3 %v500_v2 }
  0x6b   : > { %451 = vmatmul.f32.gmra.mxu0 %v393_v60  ;;  %474 = vmatmul.f32.gmra.mxu1 %v393_v60 }
  0xe0   : > { %v449_v6 = vpop.f32.mrf.mxu0  ;;  %v472_v7 = vpop.f32.mrf.mxu1 }
  0xe1   : > { %v450_v8 = vadd.f32 %v449_v6, %v428_v4  ;;  %v473_v9 = vadd.f32 %v472_v7, %v429_v5 }
  0xe3   : > { %v478_v10 = vmax.f32 %v450_v8, 0.0  ;;  %v479_v11 = vmax.f32 %v473_v9, 0.0 }
  0xe5   : > { %532 = vmatmul.f32.vlgmr.msra.gmra.mxu2 %v478_v10  ;;  %555 = vmatmul.f32.vlgmr.msra.gmra.mxu3 %v479_v11 }
  0xe8   : > { %v452_v12 = vpop.f32.mrf.mxu0  ;;  %v475_v13 = vpop.f32.mrf.mxu1 }
  0xe9   : > { %v453_v14 = vadd.f32 %v452_v12, %v428_v4  ;;  %v476_v15 = vadd.f32 %v475_v13, %v429_v5 }
  0xeb   : > { %v480_v16 = vmax.f32 %v453_v14, 0.0  ;;  %v481_v17 = vmax.f32 %v476_v15, 0.0 }
  0xed   : > { %535 = vmatmul.f32.gmra.mxu2 %v480_v16  ;;  %558 = vmatmul.f32.gmra.mxu3 %v481_v17 }
 0x168   : > { %v533_v18 = vpop.f32.mrf.mxu2  ;;  %v556_v20 = vpop.f32.mrf.mxu3 }
 0x169   : > { %v557_v21 = vadd.f32 %v556_v20, %v533_v18 }
 0x16b   : > { %v562_v22 = vadd.f32 %v557_v21, %v482_v19 }
 0x16d   : > { %564 = vst [vmem:[#allocation2] sm:$0xff] %v562_v22 }
 0x170   : > { %v536_v23 = vpop.f32.mrf.mxu2  ;;  %v559_v25 = vpop.f32.mrf.mxu3 }
 0x171   : > { %v560_v26 = vadd.f32 %v559_v25, %v536_v23  ;;  %569 = sbr.rel (%p730_p2) target bundleno = 384 (0x180), region = 68 }
 0x173   : > { %v563_v27 = vadd.f32 %v560_v26, %v483_v24 }
 0x175   : > { %565 = vst [vmem:[#allocation2 + $0x8] sm:$0xff] %v563_v27 }
 0x176   : > { %v570_v28 = vld [vmem:[#allocation2] sm:$0xff] }
 0x177   : > { %v828_v29 = vld [vmem:[%s1318_s5] ss:$0 sm:$0xff] }
 0x178   : > { %v576_v31 = vadd.f32 %v828_v29, %v570_v28 }
 0x17a   : > { %578 = vst [vmem:[#allocation12] sm:$0xff] %v576_v31 }
 0x17c   : > { %v571_v30 = vld [vmem:[#allocation2 + $0x8] sm:$0xff] }
 0x17d   : > { %v577_v32 = vadd.f32 %v828_v29, %v571_v30 }
 0x17f   : > { %579 = vst [vmem:[#allocation12 + $0x8] sm:$0xff] %v577_v32 }
 0x180 PF: > { %p768_p3 = scmp.eq.s32.totalorder %s1158_s29, 1  ;;  %s590_s13 = sshll.u32 %s1319_s6, 4  ;;  %s591_s13 = int_to_ptr.hbm [resolvable:$true] %s590_s13 }
 0x181   : > { %s1048_s14 = smov [#allocation12]   ;;  %s1049_s20 = smov 128  }
 0x182   : > { %s588_s23 = sshll.u32 %s1048_s14, 4  ;;  %s1050_s27 = smov 8   ;;  %s589_s23 = int_to_ptr.vmem [resolvable:$true] %s588_s23 }
 0x183   : > { %748 = dma.vmem_to_hbm [thread:$0]  (%p768_p3), %s589_s23, 256, %s591_s13, [#allocation6], %s1049_s20, %s1049_s20, %s1050_s27  }
 0x184   : > { %1014 = dma.done.wait (%p768_p3), [#allocation6], 256  }
 0x185   : > { %1016 = vsyncadd (%p768_p3), [#allocation6], 4294967040 }
 0x186 PF: > { %s1337_s30 = sld [smem:[#allocation18_spill]]  ;;  %s1341_s0 = smov %s1023_s21 }
 0x187   : > { %s1338_s8 = sld [smem:[#allocation17_spill]]  ;;  %s1343_s23 = smov %s1035_s24 }
 0x188   : > { %s1339_s22 = sld [smem:[#allocation20_spill]] }
 0x189   : > { %s1340_s29 = sld [smem:[#allocation19_spill]] }
 0x18c   : > { %s25_s25 = sadd.s32 1, %s1337_s30  }
 0x18d   : > { %p22_p4 = scmp.ge.s32.totalorder %s25_s25, 4   ;;  %s1342_s21 = smov %s1338_s8 }
 0x18f   : > { %s1344_s24 = smov %s1340_s29  ;;  %24 = sbr.rel (!%p22_p4) target bundleno = 11 (0xb), region = 120 }
 0x194   :  { %607 = vsyncpa [#allocation5], 1 }
 0x195   :  { %609 = vsyncpa [#allocation5 + $0x1], 1 }
 0x196   :  { %610 = vsyncpa [#allocation8], 1 }
 0x197   :  { %612 = vsyncpa [#allocation8 + $0x1], 1 }
 0x198   :  { %613 = vsyncpa [#allocation11], 1 }
 0x199   :  { %615 = vsyncpa [#allocation11 + $0x1], 1 }
 0x19a   :  { %616 = vsyncpa [#allocation6], 1 }
 0x19b   :  { %618 = vsyncpa [#allocation6 + $0x1], 1 }

</bundles_post_ra>
